<compile_context>
chip_gen: v7x
topology: tpu7x:2x2x1
jax: 0.10.0
libtpu: 0.0.40
codegen_flags: <defaults>
</compile_context>

<pallas_src>
import functools

import jax
import jax.numpy as jnp
from jax import lax
from jax.experimental import pallas as pl
from jax.experimental.pallas import tpu as pltpu

_EPS = 1e-5  # GroupNorm default eps


def _mac_matmul(a, x):
    """a @ x via an unrolled VPU multiply-accumulate (for tiny contraction K)."""
    k = a.shape[1]
    acc = a[:, 0:1] * x[0:1, :]
    for i in range(1, k):
        acc = acc + a[:, i:i + 1] * x[i:i + 1, :]
    return acc


def _conv_block_kernel(yr_ref, yi_ref, wr_ref, wi_ref, agg_ref, p_ref,
                       or_ref, oi_ref, *, use_mxu, hw):
    """1x1 conv (channel matmul) + GroupNorm + ReLU for one sample.

    yr_ref / yi_ref: (1, C, HW)   real / imag input streams, f32
    wr_ref / wi_ref: (C2, C)      conv weight halves (bf16 on MXU path, f32 on VPU path)
    agg_ref:         (C2, C2)     group-mean aggregation matrix, f32:
                                  agg[i, j] = 1/(Cg*HW) if i, j are in the same group
    p_ref:           (C2, 3)      packed [bias, gamma, beta] columns, f32
    or_ref / oi_ref: (1, C, HW)   real / imag output halves, f32
    """
    yr = yr_ref[0]                                   # (C, HW)
    yi = yi_ref[0]
    wr = wr_ref[...]
    wi = wi_ref[...]
    p = p_ref[...]
    b, gamma, beta = p[:, 0:1], p[:, 1:2], p[:, 2:3]

    if use_mxu:
        # bf16 x bf16 -> f32 accumulate on the MXU (cast done in-kernel so the
        # HBM stream stays f32 and no standalone XLA cast pass is created).
        z = (jnp.dot(wr, yr.astype(jnp.bfloat16), preferred_element_type=jnp.float32)
             + jnp.dot(wi, yi.astype(jnp.bfloat16), preferred_element_type=jnp.float32))
    else:
        # K = C is tiny: unrolled VPU MAC (MXU would be pure fill/drain).
        z = _mac_matmul(wr, yr) + _mac_matmul(wi, yi)         # (C2, HW) f32

    # ---- GroupNorm statistics, bias folded analytically (x = z + b) ----
    s1 = jnp.sum(z, axis=1, keepdims=True)                    # (C2, 1)  sum z
    s2 = jnp.sum(z * z, axis=1, keepdims=True)                # (C2, 1)  sum z^2
    hw_f = jnp.float32(hw)
    sum_x = s1 + hw_f * b                                     # sum (z + b)
    sumsq_x = s2 + 2.0 * b * s1 + hw_f * (b * b)              # sum (z + b)^2
    stats = jnp.concatenate([sum_x, sumsq_x], axis=1)         # (C2, 2)

    # Per-channel group mean / E[x^2] via a tiny VPU MAC (output is (C2, 2):
    # routing this through the MXU is pure fill/drain latency).
    g = _mac_matmul(agg_ref[...], stats)                      # (C2, 2)
    mean_c = g[:, 0:1]
    var_c = jnp.maximum(g[:, 1:2] - mean_c * mean_c, 0.0)     # clamp f32 cancellation

    # Folded affine: a single FMA per element, then ReLU.
    scale = gamma * lax.rsqrt(var_c + _EPS)                   # (C2, 1)
    shift = (b - mean_c) * scale + beta                       # (C2, 1)
    out = jnp.maximum(z * scale + shift, 0.0)                 # (C2, HW)

    c = or_ref.shape[1]
    or_ref[0] = out[:c].astype(or_ref.dtype)
    oi_ref[0] = out[c:].astype(oi_ref.dtype)


def conv_block(yr, yi, w, b, gamma, beta, num_groups):
    """yr, yi: (N, C, Hf, Wf) f32 -> (out_r, out_i) same shapes.

    1x1 conv over the 2C stacked (real, imag) channels + GroupNorm + ReLU.
    """
    n, c, hf, wf = yr.shape
    c2 = 2 * c
    assert c2 % num_groups == 0, (c2, num_groups)
    cg = c2 // num_groups
    hw = hf * wf
    # Crossover is chip-dependent (v5e MXU fill is short); >=16 covers all gens.
    use_mxu = c2 >= 16

    yr2 = yr.reshape(n, c, hw)
    yi2 = yi.reshape(n, c, hw)

    w_dt = jnp.bfloat16 if use_mxu else jnp.float32
    wr = w[:, :c].astype(w_dt)                                 # (C2, C)
    wi = w[:, c:].astype(w_dt)                                 # (C2, C)

    # Group-mean aggregation matrix (constant): row i sums the channels of
    # channel i's group and divides by the group element count Cg*HW.
    gid = jnp.arange(c2) // cg
    agg = (gid[:, None] == gid[None, :]).astype(jnp.float32) / float(cg * hw)

    # Pack bias / gamma / beta into one resident parameter block.
    pparams = jnp.stack([b, gamma, beta], axis=1).astype(jnp.float32)   # (C2, 3)

    # Device-aware VMEM budget: 2x double-buffered (2 in + 2 out) f32 blocks,
    # one f32 (C2, HW) temporary, resident params; capped at 3/4 of capacity.
    try:
        vmem_cap = pltpu.get_tpu_info().vmem_capacity_bytes
    except Exception:                                          # pragma: no cover
        vmem_cap = 64 * 2**20
    stream_block = 4 * c * hw * 4                              # 2 in + 2 out blocks
    param_bytes = (2 * c2 * c + c2 * c2 + c2 * 3) * 4
    need = 2 * stream_block + c2 * hw * 4 + param_bytes
    vmem_limit = int(min(vmem_cap * 3 // 4, max(32 * 2**20, 2 * need)))

    out_r, out_i = pl.pallas_call(
        functools.partial(_conv_block_kernel, use_mxu=use_mxu, hw=hw),
        out_shape=(jax.ShapeDtypeStruct((n, c, hw), jnp.float32),
                   jax.ShapeDtypeStruct((n, c, hw), jnp.float32)),
        grid=(n,),
        in_specs=[
            pl.BlockSpec((1, c, hw), lambda i: (i, 0, 0)),     # real stream
            pl.BlockSpec((1, c, hw), lambda i: (i, 0, 0)),     # imag stream
            pl.BlockSpec((c2, c), lambda i: (0, 0)),           # conv weight (real half)
            pl.BlockSpec((c2, c), lambda i: (0, 0)),           # conv weight (imag half)
            pl.BlockSpec((c2, c2), lambda i: (0, 0)),          # group agg matrix
            pl.BlockSpec((c2, 3), lambda i: (0, 0)),           # packed b/gamma/beta
        ],
        out_specs=(pl.BlockSpec((1, c, hw), lambda i: (i, 0, 0)),
                   pl.BlockSpec((1, c, hw), lambda i: (i, 0, 0))),
        compiler_params=pltpu.CompilerParams(
            dimension_semantics=("parallel",),
            vmem_limit_bytes=vmem_limit,
        ),
    )(yr2, yi2, wr, wi, agg, pparams)

    return out_r.reshape(n, c, hf, wf), out_i.reshape(n, c, hf, wf)


def _forward2(x, w, b, gamma, beta, num_groups):
    """Equivalent of FourierUnit._forward2 applied to a batch of NCHW slabs."""
    # torch.fft.rfftn(x, dim=[3, 2]): real (halved) transform along dim 2, full
    # fft along dim 3; jnp.fft.rfftn(axes=[3, 2]) has identical semantics.
    yc = jnp.fft.rfftn(x, axes=[3, 2])                         # (N, C, hs//2+1, W)
    yr = jnp.real(yc).astype(jnp.float32)
    yi = jnp.imag(yc).astype(jnp.float32)

    out_r, out_i = conv_block(yr, yi, w, b, gamma, beta, num_groups)  # Pallas hot path

    # No s= (matches torch.fft.irfftn default): transformed dim -> 2*(Hf-1).
    out = jnp.fft.irfftn(lax.complex(out_r, out_i), axes=[3, 2])
    return out.astype(x.dtype)


def fourier_unit_forward(x, params, num_groups):
    """Equivalent of FourierUnit.forward.  x: (N, C, H, W)."""
    n, c, h, wd = x.shape
    w, b, gamma, beta = params
    # Stack the bot/top slabs into one 2N batch: single FFT, single pallas_call
    # with grid=(2N,), single inverse FFT.
    slabs = jnp.concatenate([x[:, :, :-1, :], x[:, :, 1:, :]], axis=0)   # (2N, C, H-1, W)
    y = _forward2(slabs, w, b, gamma, beta, num_groups)                  # (2N, C, 2*(Hf-1), W)
    bot, top = y[:n], y[n:]
    return jnp.concatenate(
        [bot[:, :, :h // 2, :], top[:, :, h // 2 - 1:, :]], axis=2)


if __name__ == "__main__":
    # Small shapes consistent with the module: NCHW input.
    N, C, H, W = 2, 4, 16, 16
    chgn = 2                      # GroupNorm groups for the 2C-channel ConvBlock
    c2 = 2 * C

    key = jax.random.PRNGKey(0)
    kx, kw, kb = jax.random.split(key, 3)

    x = jax.random.normal(kx, (N, C, H, W), dtype=jnp.float32)

    # Deterministic synthetic ConvBlock parameters (1x1 conv weight, bias, GN affine).
    conv_w = 0.1 * jax.random.normal(kw, (c2, c2), dtype=jnp.float32)
    conv_b = 0.01 * jax.random.normal(kb, (c2,), dtype=jnp.float32)
    gn_gamma = jnp.ones((c2,), dtype=jnp.float32)
    gn_beta = jnp.zeros((c2,), dtype=jnp.float32)
    params = (conv_w, conv_b, gn_gamma, gn_beta)

    fn = jax.jit(functools.partial(fourier_unit_forward, num_groups=chgn))
    out = fn(x, params)
    jax.block_until_ready(out)

    # Output rows = H//2 + (2*((H-1)//2) - (H//2 - 1)) = 15 for H=16 (matches torch).
    assert out.shape == (N, C, H - 1, W), out.shape
    assert bool(jnp.all(jnp.isfinite(out)))
    print("KERNEL_OK")
</pallas_src>

<mosaic_0001>
module attributes {stable_mosaic.version = 11 : i64} {
  func.func @_conv_block_kernel(%arg0: i32, %arg1: memref<1x4x128xf32, #tpu.memory_space<vmem>>, %arg2: memref<1x4x128xf32, #tpu.memory_space<vmem>>, %arg3: memref<8x4xf32, #tpu.memory_space<vmem>>, %arg4: memref<8x4xf32, #tpu.memory_space<vmem>>, %arg5: memref<8x8xf32, #tpu.memory_space<vmem>>, %arg6: memref<8x3xf32, #tpu.memory_space<vmem>>, %arg7: memref<1x4x128xf32, #tpu.memory_space<vmem>>, %arg8: memref<1x4x128xf32, #tpu.memory_space<vmem>>) attributes {dimension_semantics = [#tpu.dimension_semantics<parallel>], iteration_bounds = array<i64: 4>, scalar_prefetch = 0 : i64, scratch_operands = 0 : i64, tpu.core_type = #tpu.core_type<tc>, window_params = [{transform_indices = @transform_0, window_bounds = array<i64: 1, 4, 128>}, {transform_indices = @transform_1, window_bounds = array<i64: 1, 4, 128>}, {pipeline_mode = #tpu.pipeline_mode<synchronous>, transform_indices = @transform_2, window_bounds = array<i64: 8, 4>}, {pipeline_mode = #tpu.pipeline_mode<synchronous>, transform_indices = @transform_3, window_bounds = array<i64: 8, 4>}, {pipeline_mode = #tpu.pipeline_mode<synchronous>, transform_indices = @transform_4, window_bounds = array<i64: 8, 8>}, {pipeline_mode = #tpu.pipeline_mode<synchronous>, transform_indices = @transform_5, window_bounds = array<i64: 8, 3>}, {transform_indices = @transform_6, window_bounds = array<i64: 1, 4, 128>}, {transform_indices = @transform_7, window_bounds = array<i64: 1, 4, 128>}]} {
    %c0 = arith.constant 0 : index
    %c0_0 = arith.constant 0 : index
    %c0_1 = arith.constant 0 : index
    %0 = vector.load %arg1[%c0, %c0_0, %c0_1] : memref<1x4x128xf32, #tpu.memory_space<vmem>>, vector<1x4x128xf32>
    %1 = vector.shape_cast %0 : vector<1x4x128xf32> to vector<4x128xf32>
    %c0_2 = arith.constant 0 : index
    %c0_3 = arith.constant 0 : index
    %c0_4 = arith.constant 0 : index
    %2 = vector.load %arg2[%c0_2, %c0_3, %c0_4] : memref<1x4x128xf32, #tpu.memory_space<vmem>>, vector<1x4x128xf32>
    %3 = vector.shape_cast %2 : vector<1x4x128xf32> to vector<4x128xf32>
    %c0_5 = arith.constant 0 : index
    %c0_6 = arith.constant 0 : index
    %4 = vector.load %arg3[%c0_5, %c0_6] : memref<8x4xf32, #tpu.memory_space<vmem>>, vector<8x4xf32>
    %c0_7 = arith.constant 0 : index
    %c0_8 = arith.constant 0 : index
    %5 = vector.load %arg4[%c0_7, %c0_8] : memref<8x4xf32, #tpu.memory_space<vmem>>, vector<8x4xf32>
    %c0_9 = arith.constant 0 : index
    %c0_10 = arith.constant 0 : index
    %6 = vector.load %arg6[%c0_9, %c0_10] : memref<8x3xf32, #tpu.memory_space<vmem>>, vector<8x3xf32>
    %7 = vector.extract_strided_slice %6 {offsets = [0, 0], sizes = [8, 1], strides = [1, 1]} : vector<8x3xf32> to vector<8x1xf32>
    %8 = vector.extract_strided_slice %6 {offsets = [0, 1], sizes = [8, 1], strides = [1, 1]} : vector<8x3xf32> to vector<8x1xf32>
    %9 = vector.extract_strided_slice %6 {offsets = [0, 2], sizes = [8, 1], strides = [1, 1]} : vector<8x3xf32> to vector<8x1xf32>
    %10 = vector.extract_strided_slice %4 {offsets = [0, 0], sizes = [8, 1], strides = [1, 1]} : vector<8x4xf32> to vector<8x1xf32>
    %11 = vector.extract_strided_slice %1 {offsets = [0, 0], sizes = [1, 128], strides = [1, 1]} : vector<4x128xf32> to vector<1x128xf32>
    %12 = vector.broadcast %10 : vector<8x1xf32> to vector<8x128xf32>
    %13 = vector.broadcast %11 : vector<1x128xf32> to vector<8x128xf32>
    %14 = arith.mulf %12, %13 : vector<8x128xf32>
    %15 = vector.extract_strided_slice %4 {offsets = [0, 1], sizes = [8, 1], strides = [1, 1]} : vector<8x4xf32> to vector<8x1xf32>
    %16 = vector.extract_strided_slice %1 {offsets = [1, 0], sizes = [1, 128], strides = [1, 1]} : vector<4x128xf32> to vector<1x128xf32>
    %17 = vector.broadcast %15 : vector<8x1xf32> to vector<8x128xf32>
    %18 = vector.broadcast %16 : vector<1x128xf32> to vector<8x128xf32>
    %19 = arith.mulf %17, %18 : vector<8x128xf32>
    %20 = arith.addf %14, %19 : vector<8x128xf32>
    %21 = vector.extract_strided_slice %4 {offsets = [0, 2], sizes = [8, 1], strides = [1, 1]} : vector<8x4xf32> to vector<8x1xf32>
    %22 = vector.extract_strided_slice %1 {offsets = [2, 0], sizes = [1, 128], strides = [1, 1]} : vector<4x128xf32> to vector<1x128xf32>
    %23 = vector.broadcast %21 : vector<8x1xf32> to vector<8x128xf32>
    %24 = vector.broadcast %22 : vector<1x128xf32> to vector<8x128xf32>
    %25 = arith.mulf %23, %24 : vector<8x128xf32>
    %26 = arith.addf %20, %25 : vector<8x128xf32>
    %27 = vector.extract_strided_slice %4 {offsets = [0, 3], sizes = [8, 1], strides = [1, 1]} : vector<8x4xf32> to vector<8x1xf32>
    %28 = vector.extract_strided_slice %1 {offsets = [3, 0], sizes = [1, 128], strides = [1, 1]} : vector<4x128xf32> to vector<1x128xf32>
    %29 = vector.broadcast %27 : vector<8x1xf32> to vector<8x128xf32>
    %30 = vector.broadcast %28 : vector<1x128xf32> to vector<8x128xf32>
    %31 = arith.mulf %29, %30 : vector<8x128xf32>
    %32 = arith.addf %26, %31 : vector<8x128xf32>
    %33 = vector.extract_strided_slice %5 {offsets = [0, 0], sizes = [8, 1], strides = [1, 1]} : vector<8x4xf32> to vector<8x1xf32>
    %34 = vector.extract_strided_slice %3 {offsets = [0, 0], sizes = [1, 128], strides = [1, 1]} : vector<4x128xf32> to vector<1x128xf32>
    %35 = vector.broadcast %33 : vector<8x1xf32> to vector<8x128xf32>
    %36 = vector.broadcast %34 : vector<1x128xf32> to vector<8x128xf32>
    %37 = arith.mulf %35, %36 : vector<8x128xf32>
    %38 = vector.extract_strided_slice %5 {offsets = [0, 1], sizes = [8, 1], strides = [1, 1]} : vector<8x4xf32> to vector<8x1xf32>
    %39 = vector.extract_strided_slice %3 {offsets = [1, 0], sizes = [1, 128], strides = [1, 1]} : vector<4x128xf32> to vector<1x128xf32>
    %40 = vector.broadcast %38 : vector<8x1xf32> to vector<8x128xf32>
    %41 = vector.broadcast %39 : vector<1x128xf32> to vector<8x128xf32>
    %42 = arith.mulf %40, %41 : vector<8x128xf32>
    %43 = arith.addf %37, %42 : vector<8x128xf32>
    %44 = vector.extract_strided_slice %5 {offsets = [0, 2], sizes = [8, 1], strides = [1, 1]} : vector<8x4xf32> to vector<8x1xf32>
    %45 = vector.extract_strided_slice %3 {offsets = [2, 0], sizes = [1, 128], strides = [1, 1]} : vector<4x128xf32> to vector<1x128xf32>
    %46 = vector.broadcast %44 : vector<8x1xf32> to vector<8x128xf32>
    %47 = vector.broadcast %45 : vector<1x128xf32> to vector<8x128xf32>
    %48 = arith.mulf %46, %47 : vector<8x128xf32>
    %49 = arith.addf %43, %48 : vector<8x128xf32>
    %50 = vector.extract_strided_slice %5 {offsets = [0, 3], sizes = [8, 1], strides = [1, 1]} : vector<8x4xf32> to vector<8x1xf32>
    %51 = vector.extract_strided_slice %3 {offsets = [3, 0], sizes = [1, 128], strides = [1, 1]} : vector<4x128xf32> to vector<1x128xf32>
    %52 = vector.broadcast %50 : vector<8x1xf32> to vector<8x128xf32>
    %53 = vector.broadcast %51 : vector<1x128xf32> to vector<8x128xf32>
    %54 = arith.mulf %52, %53 : vector<8x128xf32>
    %55 = arith.addf %49, %54 : vector<8x128xf32>
    %56 = arith.addf %32, %55 : vector<8x128xf32>
    %cst = arith.constant dense<0.000000e+00> : vector<8xf32>
    %57 = vector.multi_reduction <add>, %56, %cst [1] : vector<8x128xf32> to vector<8xf32>
    %58 = vector.shape_cast %57 : vector<8xf32> to vector<8x1xf32>
    %59 = arith.mulf %56, %56 : vector<8x128xf32>
    %cst_11 = arith.constant dense<0.000000e+00> : vector<8xf32>
    %60 = vector.multi_reduction <add>, %59, %cst_11 [1] : vector<8x128xf32> to vector<8xf32>
    %61 = vector.shape_cast %60 : vector<8xf32> to vector<8x1xf32>
    %cst_12 = arith.constant 1.280000e+02 : f32
    %62 = vector.broadcast %cst_12 : f32 to vector<8x1xf32>
    %63 = arith.mulf %62, %7 : vector<8x1xf32>
    %64 = arith.addf %58, %63 : vector<8x1xf32>
    %cst_13 = arith.constant 2.000000e+00 : f32
    %65 = vector.broadcast %cst_13 : f32 to vector<8x1xf32>
    %66 = arith.mulf %65, %7 : vector<8x1xf32>
    %67 = arith.mulf %66, %58 : vector<8x1xf32>
    %68 = arith.addf %61, %67 : vector<8x1xf32>
    %69 = arith.mulf %7, %7 : vector<8x1xf32>
    %cst_14 = arith.constant 1.280000e+02 : f32
    %70 = vector.broadcast %cst_14 : f32 to vector<8x1xf32>
    %71 = arith.mulf %70, %69 : vector<8x1xf32>
    %72 = arith.addf %68, %71 : vector<8x1xf32>
    %73 = tpu.concatenate %64, %72 in 1 : vector<8x1xf32>, vector<8x1xf32> -> vector<8x2xf32>
    %c0_15 = arith.constant 0 : index
    %c0_16 = arith.constant 0 : index
    %74 = vector.load %arg5[%c0_15, %c0_16] : memref<8x8xf32, #tpu.memory_space<vmem>>, vector<8x8xf32>
    %75 = vector.extract_strided_slice %74 {offsets = [0, 0], sizes = [8, 1], strides = [1, 1]} : vector<8x8xf32> to vector<8x1xf32>
    %76 = vector.extract_strided_slice %73 {offsets = [0, 0], sizes = [1, 2], strides = [1, 1]} : vector<8x2xf32> to vector<1x2xf32>
    %77 = vector.broadcast %75 : vector<8x1xf32> to vector<8x2xf32>
    %78 = vector.broadcast %76 : vector<1x2xf32> to vector<8x2xf32>
    %79 = arith.mulf %77, %78 : vector<8x2xf32>
    %80 = vector.extract_strided_slice %74 {offsets = [0, 1], sizes = [8, 1], strides = [1, 1]} : vector<8x8xf32> to vector<8x1xf32>
    %81 = vector.extract_strided_slice %73 {offsets = [1, 0], sizes = [1, 2], strides = [1, 1]} : vector<8x2xf32> to vector<1x2xf32>
    %82 = vector.broadcast %80 : vector<8x1xf32> to vector<8x2xf32>
    %83 = vector.broadcast %81 : vector<1x2xf32> to vector<8x2xf32>
    %84 = arith.mulf %82, %83 : vector<8x2xf32>
    %85 = arith.addf %79, %84 : vector<8x2xf32>
    %86 = vector.extract_strided_slice %74 {offsets = [0, 2], sizes = [8, 1], strides = [1, 1]} : vector<8x8xf32> to vector<8x1xf32>
    %87 = vector.extract_strided_slice %73 {offsets = [2, 0], sizes = [1, 2], strides = [1, 1]} : vector<8x2xf32> to vector<1x2xf32>
    %88 = vector.broadcast %86 : vector<8x1xf32> to vector<8x2xf32>
    %89 = vector.broadcast %87 : vector<1x2xf32> to vector<8x2xf32>
    %90 = arith.mulf %88, %89 : vector<8x2xf32>
    %91 = arith.addf %85, %90 : vector<8x2xf32>
    %92 = vector.extract_strided_slice %74 {offsets = [0, 3], sizes = [8, 1], strides = [1, 1]} : vector<8x8xf32> to vector<8x1xf32>
    %93 = vector.extract_strided_slice %73 {offsets = [3, 0], sizes = [1, 2], strides = [1, 1]} : vector<8x2xf32> to vector<1x2xf32>
    %94 = vector.broadcast %92 : vector<8x1xf32> to vector<8x2xf32>
    %95 = vector.broadcast %93 : vector<1x2xf32> to vector<8x2xf32>
    %96 = arith.mulf %94, %95 : vector<8x2xf32>
    %97 = arith.addf %91, %96 : vector<8x2xf32>
    %98 = vector.extract_strided_slice %74 {offsets = [0, 4], sizes = [8, 1], strides = [1, 1]} : vector<8x8xf32> to vector<8x1xf32>
    %99 = vector.extract_strided_slice %73 {offsets = [4, 0], sizes = [1, 2], strides = [1, 1]} : vector<8x2xf32> to vector<1x2xf32>
    %100 = vector.broadcast %98 : vector<8x1xf32> to vector<8x2xf32>
    %101 = vector.broadcast %99 : vector<1x2xf32> to vector<8x2xf32>
    %102 = arith.mulf %100, %101 : vector<8x2xf32>
    %103 = arith.addf %97, %102 : vector<8x2xf32>
    %104 = vector.extract_strided_slice %74 {offsets = [0, 5], sizes = [8, 1], strides = [1, 1]} : vector<8x8xf32> to vector<8x1xf32>
    %105 = vector.extract_strided_slice %73 {offsets = [5, 0], sizes = [1, 2], strides = [1, 1]} : vector<8x2xf32> to vector<1x2xf32>
    %106 = vector.broadcast %104 : vector<8x1xf32> to vector<8x2xf32>
    %107 = vector.broadcast %105 : vector<1x2xf32> to vector<8x2xf32>
    %108 = arith.mulf %106, %107 : vector<8x2xf32>
    %109 = arith.addf %103, %108 : vector<8x2xf32>
    %110 = vector.extract_strided_slice %74 {offsets = [0, 6], sizes = [8, 1], strides = [1, 1]} : vector<8x8xf32> to vector<8x1xf32>
    %111 = vector.extract_strided_slice %73 {offsets = [6, 0], sizes = [1, 2], strides = [1, 1]} : vector<8x2xf32> to vector<1x2xf32>
    %112 = vector.broadcast %110 : vector<8x1xf32> to vector<8x2xf32>
    %113 = vector.broadcast %111 : vector<1x2xf32> to vector<8x2xf32>
    %114 = arith.mulf %112, %113 : vector<8x2xf32>
    %115 = arith.addf %109, %114 : vector<8x2xf32>
    %116 = vector.extract_strided_slice %74 {offsets = [0, 7], sizes = [8, 1], strides = [1, 1]} : vector<8x8xf32> to vector<8x1xf32>
    %117 = vector.extract_strided_slice %73 {offsets = [7, 0], sizes = [1, 2], strides = [1, 1]} : vector<8x2xf32> to vector<1x2xf32>
    %118 = vector.broadcast %116 : vector<8x1xf32> to vector<8x2xf32>
    %119 = vector.broadcast %117 : vector<1x2xf32> to vector<8x2xf32>
    %120 = arith.mulf %118, %119 : vector<8x2xf32>
    %121 = arith.addf %115, %120 : vector<8x2xf32>
    %122 = vector.extract_strided_slice %121 {offsets = [0, 0], sizes = [8, 1], strides = [1, 1]} : vector<8x2xf32> to vector<8x1xf32>
    %123 = vector.extract_strided_slice %121 {offsets = [0, 1], sizes = [8, 1], strides = [1, 1]} : vector<8x2xf32> to vector<8x1xf32>
    %124 = arith.mulf %122, %122 : vector<8x1xf32>
    %125 = arith.subf %123, %124 : vector<8x1xf32>
    %cst_17 = arith.constant 0.000000e+00 : f32
    %126 = vector.broadcast %cst_17 : f32 to vector<8x1xf32>
    %127 = arith.maximumf %125, %126 : vector<8x1xf32>
    %cst_18 = arith.constant 9.99999974E-6 : f32
    %128 = vector.broadcast %cst_18 : f32 to vector<8x1xf32>
    %129 = arith.addf %127, %128 : vector<8x1xf32>
    %130 = math.rsqrt %129 : vector<8x1xf32>
    %131 = arith.mulf %8, %130 : vector<8x1xf32>
    %132 = arith.subf %7, %122 : vector<8x1xf32>
    %133 = arith.mulf %132, %131 : vector<8x1xf32>
    %134 = arith.addf %133, %9 : vector<8x1xf32>
    %135 = vector.broadcast %131 : vector<8x1xf32> to vector<8x128xf32>
    %136 = arith.mulf %56, %135 : vector<8x128xf32>
    %137 = vector.broadcast %134 : vector<8x1xf32> to vector<8x128xf32>
    %138 = arith.addf %136, %137 : vector<8x128xf32>
    %cst_19 = arith.constant 0.000000e+00 : f32
    %139 = vector.broadcast %cst_19 : f32 to vector<8x128xf32>
    %140 = arith.maximumf %138, %139 : vector<8x128xf32>
    %141 = vector.extract_strided_slice %140 {offsets = [0, 0], sizes = [4, 128], strides = [1, 1]} : vector<8x128xf32> to vector<4x128xf32>
    %c0_20 = arith.constant 0 : index
    %c0_21 = arith.constant 0 : index
    %c0_22 = arith.constant 0 : index
    %142 = vector.load %arg7[%c0_20, %c0_21, %c0_22] : memref<1x4x128xf32, #tpu.memory_space<vmem>>, vector<1x4x128xf32>
    %143 = vector.shape_cast %142 : vector<1x4x128xf32> to vector<4x128xf32>
    %144 = vector.shape_cast %141 : vector<4x128xf32> to vector<1x4x128xf32>
    tpu.vector_store %arg7[%c0_20, %c0_21, %c0_22], %144 {strides = array<i32>} : memref<1x4x128xf32, #tpu.memory_space<vmem>>, vector<1x4x128xf32>,
    %145 = vector.extract_strided_slice %140 {offsets = [4, 0], sizes = [4, 128], strides = [1, 1]} : vector<8x128xf32> to vector<4x128xf32>
    %c0_23 = arith.constant 0 : index
    %c0_24 = arith.constant 0 : index
    %c0_25 = arith.constant 0 : index
    %146 = vector.load %arg8[%c0_23, %c0_24, %c0_25] : memref<1x4x128xf32, #tpu.memory_space<vmem>>, vector<1x4x128xf32>
    %147 = vector.shape_cast %146 : vector<1x4x128xf32> to vector<4x128xf32>
    %148 = vector.shape_cast %145 : vector<4x128xf32> to vector<1x4x128xf32>
    tpu.vector_store %arg8[%c0_23, %c0_24, %c0_25], %148 {strides = array<i32>} : memref<1x4x128xf32, #tpu.memory_space<vmem>>, vector<1x4x128xf32>,
    return
  }
  func.func @transform_0(%arg0: i32) -> (i32, i32, i32) {
    %c0_i32 = arith.constant 0 : i32
    %c0_i32_0 = arith.constant 0 : i32
    %c0_i32_1 = arith.constant 0 : i32
    return %arg0, %c0_i32, %c0_i32_0 : i32, i32, i32
  }
  func.func @transform_1(%arg0: i32) -> (i32, i32, i32) {
    %c0_i32 = arith.constant 0 : i32
    %c0_i32_0 = arith.constant 0 : i32
    %c0_i32_1 = arith.constant 0 : i32
    return %arg0, %c0_i32, %c0_i32_0 : i32, i32, i32
  }
  func.func @transform_2(%arg0: i32) -> (i32, i32) {
    %c0_i32 = arith.constant 0 : i32
    %c0_i32_0 = arith.constant 0 : i32
    %c0_i32_1 = arith.constant 0 : i32
    return %c0_i32, %c0_i32_0 : i32, i32
  }
  func.func @transform_3(%arg0: i32) -> (i32, i32) {
    %c0_i32 = arith.constant 0 : i32
    %c0_i32_0 = arith.constant 0 : i32
    %c0_i32_1 = arith.constant 0 : i32
    return %c0_i32, %c0_i32_0 : i32, i32
  }
  func.func @transform_4(%arg0: i32) -> (i32, i32) {
    %c0_i32 = arith.constant 0 : i32
    %c0_i32_0 = arith.constant 0 : i32
    %c0_i32_1 = arith.constant 0 : i32
    return %c0_i32, %c0_i32_0 : i32, i32
  }
  func.func @transform_5(%arg0: i32) -> (i32, i32) {
    %c0_i32 = arith.constant 0 : i32
    %c0_i32_0 = arith.constant 0 : i32
    %c0_i32_1 = arith.constant 0 : i32
    return %c0_i32, %c0_i32_0 : i32, i32
  }
  func.func @transform_6(%arg0: i32) -> (i32, i32, i32) {
    %c0_i32 = arith.constant 0 : i32
    %c0_i32_0 = arith.constant 0 : i32
    %c0_i32_1 = arith.constant 0 : i32
    return %arg0, %c0_i32, %c0_i32_0 : i32, i32, i32
  }
  func.func @transform_7(%arg0: i32) -> (i32, i32, i32) {
    %c0_i32 = arith.constant 0 : i32
    %c0_i32_0 = arith.constant 0 : i32
    %c0_i32_1 = arith.constant 0 : i32
    return %arg0, %c0_i32, %c0_i32_0 : i32, i32, i32
  }
}

</mosaic_0001>

<bundles_post_ra>
// kernel: reverse.0
= control target key start
LH: loop header
LB: loop body
LE: loop exit
PB: predicated region body
PF: predicated region fallthrough
CT: control target
= control target key end

     0   :  { %v103_v3 = vlaneseq  ;;  %v96_v18 = vld [vmem:[#allocation0 + $0x7] ss:$-1 sm:$0xff]  ;;  %v110_v19 = vld [vmem:[#allocation0 + $0x17] ss:$-1 sm:$0xff]  ;;  %s604_s0 = inlined_call_operand.vmem [shape: f32[4,4,16,6], index: 0, kind: input, shape index: {}]   ;;  %s605_s1 = inlined_call_operand.vmem [shape: f32[4,4,16,6], index: 1, kind: output, shape index: {}]  }
   0x1   :  { %v60_v0 = vld [vmem:[%s604_s0] sm:$0xff]  ;;  %v62_v1 = vld [vmem:[%s604_s0 + $0x8] sm:$0xff]  ;;  %v64_v2 = vld [vmem:[%s604_s0 + $0x10] sm:$0xff]  ;;  %v97_v20 = vrot.slane %v96_v18, 2  ;;  %v111_v21 = vrot.slane %v110_v19, 2 }
   0x2   :  { %61 = vst [vmem:[#allocation0 + $0x8] sm:$0xff] %v60_v0  ;;  %63 = vst [vmem:[#allocation0 + $0x18] sm:$0xff] %v62_v1  ;;  %v66_v4 = vld [vmem:[%s604_s0 + $0x18] sm:$0xff]  ;;  %v68_v5 = vld [vmem:[%s604_s0 + $0x20] sm:$0xff]  ;;  %v500_v10 = vshrl.u32 %v103_v3, 7 }
   0x3   :  { %65 = vst [vmem:[#allocation0 + $0x28] sm:$0xff] %v64_v2  ;;  %v70_v6 = vld [vmem:[%s604_s0 + $0x28] sm:$0xff]  ;;  %67 = vst [vmem:[#allocation0 + $0x38] sm:$0xff] %v66_v4  ;;  %v72_v7 = vld [vmem:[%s604_s0 + $0x30] sm:$0xff] }
   0x4   :  { %69 = vst [vmem:[#allocation0 + $0x48] sm:$0xff] %v68_v5  ;;  %71 = vst [vmem:[#allocation0 + $0x58] sm:$0xff] %v70_v6  ;;  %v74_v8 = vld [vmem:[%s604_s0 + $0x38] sm:$0xff]  ;;  %v76_v9 = vld [vmem:[%s604_s0 + $0x40] sm:$0xff]  ;;  %vm105_vm0 = vcmp.lt.s32.totalorder %v500_v10, 6 }
   0x5   :  { %73 = vst [vmem:[#allocation0 + $0x68] sm:$0xff] %v72_v7  ;;  %75 = vst [vmem:[#allocation0 + $0x78] sm:$0xff] %v74_v8  ;;  %v78_v11 = vld [vmem:[%s604_s0 + $0x48] sm:$0xff]  ;;  %v80_v12 = vld [vmem:[%s604_s0 + $0x50] sm:$0xff] }
   0x6   :  { %77 = vst [vmem:[#allocation0 + $0x88] sm:$0xff] %v76_v9  ;;  %v82_v13 = vld [vmem:[%s604_s0 + $0x58] sm:$0xff]  ;;  %79 = vst [vmem:[#allocation0 + $0x98] sm:$0xff] %v78_v11  ;;  %v84_v14 = vld [vmem:[%s604_s0 + $0x60] sm:$0xff] }
   0x7   :  { %81 = vst [vmem:[#allocation0 + $0xa8] sm:$0xff] %v80_v12  ;;  %83 = vst [vmem:[#allocation0 + $0xb8] sm:$0xff] %v82_v13  ;;  %v86_v15 = vld [vmem:[%s604_s0 + $0x68] sm:$0xff]  ;;  %v88_v16 = vld [vmem:[%s604_s0 + $0x70] sm:$0xff] }
   0x8   :  { %85 = vst [vmem:[#allocation0 + $0xc8] sm:$0xff] %v84_v14  ;;  %87 = vst [vmem:[#allocation0 + $0xd8] sm:$0xff] %v86_v15  ;;  %v90_v17 = vld [vmem:[%s604_s0 + $0x78] sm:$0xff]  ;;  %v124_v22 = vld [vmem:[#allocation0 + $0x27] ss:$-1 sm:$0xff] }
   0x9   :  { %89 = vst [vmem:[#allocation0 + $0xe8] sm:$0xff] %v88_v16  ;;  %91 = vst [vmem:[#allocation0 + $0xf8] sm:$0xff] %v90_v17  ;;  %v138_v23 = vld [vmem:[#allocation0 + $0x37] ss:$-1 sm:$0xff]  ;;  %v125_v24 = vrot.slane %v124_v22, 2 }
   0xa   :  { %v139_v25 = vrot.slane %v138_v23, 2  ;;  %v152_v26 = vld [vmem:[#allocation0 + $0x47] ss:$-1 sm:$0xff]  ;;  %v166_v27 = vld [vmem:[#allocation0 + $0x57] ss:$-1 sm:$0xff]  ;;  %98 = vst [vmem:[#allocation1] sm:$0xff] %v97_v20 }
   0xb   :  { %v101_v28 = vld [vmem:[#allocation0 + $0xf] ss:$-1 sm:$0xff]  ;;  %112 = vst [vmem:[#allocation1 + $0x8] sm:$0xff] %v111_v21  ;;  %v115_v29 = vld [vmem:[#allocation0 + $0x1f] ss:$-1 sm:$0xff]  ;;  %126 = vst [vmem:[#allocation1 + $0x10] sm:$0xff] %v125_v24 }
   0xc   :  { %v129_v30 = vld [vmem:[#allocation0 + $0x2f] ss:$-1 sm:$0xff]  ;;  %v102_v31 = vrot.slane %v101_v28, 2  ;;  %v116_v32 = vrot.slane %v115_v29, 2  ;;  %140 = vst [vmem:[#allocation1 + $0x18] sm:$0xff] %v139_v25  ;;  %v153_v35 = vrot.slane %v152_v26, 2 }
   0xd   :  { %v130_v33 = vrot.slane %v129_v30, 2  ;;  %v143_v34 = vld [vmem:[#allocation0 + $0x3f] ss:$-1 sm:$0xff]  ;;  %v157_v37 = vld [vmem:[#allocation0 + $0x4f] ss:$-1 sm:$0xff]  ;;  %v167_v38 = vrot.slane %v166_v27, 2 }
   0xe   :  { %v144_v36 = vrot.slane %v143_v34, 2  ;;  %v171_v39 = vld [vmem:[#allocation0 + $0x5f] ss:$-1 sm:$0xff]  ;;  %106 = vst.msk [vmem:[#allocation1] sm:$0xff] %vm105_vm0, %v102_v31  ;;  %120 = vst.msk [vmem:[#allocation1 + $0x8] sm:$0xff] %vm105_vm0, %v116_v32  ;;  %v158_v40 = vrot.slane %v157_v37, 2 }
   0xf   :  { %134 = vst.msk [vmem:[#allocation1 + $0x10] sm:$0xff] %vm105_vm0, %v130_v33  ;;  %154 = vst [vmem:[#allocation1 + $0x20] sm:$0xff] %v153_v35  ;;  %v172_v41 = vrot.slane %v171_v39, 2  ;;  %v180_v42 = vld [vmem:[#allocation0 + $0x67] ss:$-1 sm:$0xff] }
  0x10   :  { %v185_v43 = vld [vmem:[#allocation0 + $0x6f] ss:$-1 sm:$0xff]  ;;  %148 = vst.msk [vmem:[#allocation1 + $0x18] sm:$0xff] %vm105_vm0, %v144_v36  ;;  %168 = vst [vmem:[#allocation1 + $0x28] sm:$0xff] %v167_v38  ;;  %v181_v44 = vrot.slane %v180_v42, 2 }
  0x11   :  { %v186_v45 = vrot.slane %v185_v43, 2  ;;  %v194_v46 = vld [vmem:[#allocation0 + $0x77] ss:$-1 sm:$0xff]  ;;  %v199_v47 = vld [vmem:[#allocation0 + $0x7f] ss:$-1 sm:$0xff]  ;;  %162 = vst.msk [vmem:[#allocation1 + $0x20] sm:$0xff] %vm105_vm0, %v158_v40 }
  0x12   :  { %176 = vst.msk [vmem:[#allocation1 + $0x28] sm:$0xff] %vm105_vm0, %v172_v41  ;;  %v195_v48 = vrot.slane %v194_v46, 2  ;;  %v200_v49 = vrot.slane %v199_v47, 2  ;;  %v208_v50 = vld [vmem:[#allocation0 + $0x87] ss:$-1 sm:$0xff]  ;;  %182 = vst [vmem:[#allocation1 + $0x30] sm:$0xff] %v181_v44 }
  0x13   :  { %v213_v51 = vld [vmem:[#allocation0 + $0x8f] ss:$-1 sm:$0xff]  ;;  %v209_v52 = vrot.slane %v208_v50, 2  ;;  %v222_v54 = vld [vmem:[#allocation0 + $0x97] ss:$-1 sm:$0xff]  ;;  %190 = vst.msk [vmem:[#allocation1 + $0x30] sm:$0xff] %vm105_vm0, %v186_v45 }
  0x14   :  { %v214_v53 = vrot.slane %v213_v51, 2  ;;  %v227_v55 = vld [vmem:[#allocation0 + $0x9f] ss:$-1 sm:$0xff]  ;;  %196 = vst [vmem:[#allocation1 + $0x38] sm:$0xff] %v195_v48  ;;  %v223_v56 = vrot.slane %v222_v54, 2 }
  0x15   :  { %v228_v57 = vrot.slane %v227_v55, 2  ;;  %v236_v58 = vld [vmem:[#allocation0 + $0xa7] ss:$-1 sm:$0xff]  ;;  %v241_v59 = vld [vmem:[#allocation0 + $0xaf] ss:$-1 sm:$0xff]  ;;  %204 = vst.msk [vmem:[#allocation1 + $0x38] sm:$0xff] %vm105_vm0, %v200_v49 }
  0x16   :  { %210 = vst [vmem:[#allocation1 + $0x40] sm:$0xff] %v209_v52  ;;  %v237_v60 = vrot.slane %v236_v58, 2  ;;  %v242_v61 = vrot.slane %v241_v59, 2  ;;  %v250_v62 = vld [vmem:[#allocation0 + $0xb7] ss:$-1 sm:$0xff]  ;;  %224 = vst [vmem:[#allocation1 + $0x48] sm:$0xff] %v223_v56 }
  0x17   :  { %v255_v63 = vld [vmem:[#allocation0 + $0xbf] ss:$-1 sm:$0xff]  ;;  %218 = vst.msk [vmem:[#allocation1 + $0x40] sm:$0xff] %vm105_vm0, %v214_v53  ;;  %v251_v0 = vrot.slane %v250_v62, 2  ;;  %v264_v2 = vld [vmem:[#allocation0 + $0xc7] ss:$-1 sm:$0xff] }
  0x18   :  { %v256_v1 = vrot.slane %v255_v63, 2  ;;  %v269_v3 = vld [vmem:[#allocation0 + $0xcf] ss:$-1 sm:$0xff]  ;;  %232 = vst.msk [vmem:[#allocation1 + $0x48] sm:$0xff] %vm105_vm0, %v228_v57  ;;  %238 = vst [vmem:[#allocation1 + $0x50] sm:$0xff] %v237_v60  ;;  %v265_v4 = vrot.slane %v264_v2, 2 }
  0x19   :  { %v270_v5 = vrot.slane %v269_v3, 2  ;;  %v278_v6 = vld [vmem:[#allocation0 + $0xd7] ss:$-1 sm:$0xff]  ;;  %v283_v7 = vld [vmem:[#allocation0 + $0xdf] ss:$-1 sm:$0xff]  ;;  %246 = vst.msk [vmem:[#allocation1 + $0x50] sm:$0xff] %vm105_vm0, %v242_v61 }
  0x1a   :  { %252 = vst [vmem:[#allocation1 + $0x58] sm:$0xff] %v251_v0  ;;  %v279_v8 = vrot.slane %v278_v6, 2  ;;  %v284_v9 = vrot.slane %v283_v7, 2  ;;  %v292_v11 = vld [vmem:[#allocation0 + $0xe7] ss:$-1 sm:$0xff]  ;;  %266 = vst [vmem:[#allocation1 + $0x60] sm:$0xff] %v265_v4 }
  0x1b   :  { %v297_v12 = vld [vmem:[#allocation0 + $0xef] ss:$-1 sm:$0xff]  ;;  %260 = vst.msk [vmem:[#allocation1 + $0x58] sm:$0xff] %vm105_vm0, %v256_v1  ;;  %v293_v13 = vrot.slane %v292_v11, 2  ;;  %v306_v15 = vld [vmem:[#allocation0 + $0xf7] ss:$-1 sm:$0xff] }
  0x1c   :  { %v298_v14 = vrot.slane %v297_v12, 2  ;;  %v311_v16 = vld [vmem:[#allocation0 + $0xff] ss:$-1 sm:$0xff]  ;;  %274 = vst.msk [vmem:[#allocation1 + $0x60] sm:$0xff] %vm105_vm0, %v270_v5  ;;  %280 = vst [vmem:[#allocation1 + $0x68] sm:$0xff] %v279_v8  ;;  %v307_v17 = vrot.slane %v306_v15, 2 }
  0x1d   :  { %v312_v18 = vrot.slane %v311_v16, 2  ;;  %v374_v19 = vld [vmem:[#allocation1] sm:$0xff]  ;;  %v376_v20 = vld [vmem:[#allocation1 + $0x8] sm:$0xff]  ;;  %v378_v21 = vld [vmem:[#allocation1 + $0x10] sm:$0xff]  ;;  %288 = vst.msk [vmem:[#allocation1 + $0x68] sm:$0xff] %vm105_vm0, %v284_v9 }
  0x1e   :  { %294 = vst [vmem:[#allocation1 + $0x70] sm:$0xff] %v293_v13  ;;  %375 = vst [vmem:[%s605_s1] sm:$0xff] %v374_v19  ;;  %v380_v22 = vld [vmem:[#allocation1 + $0x18] sm:$0xff]  ;;  %v382_v23 = vld [vmem:[#allocation1 + $0x20] sm:$0xff] }
  0x1f   :  { %377 = vst [vmem:[%s605_s1 + $0x8] sm:$0xff] %v376_v20  ;;  %379 = vst [vmem:[%s605_s1 + $0x10] sm:$0xff] %v378_v21  ;;  %v384_v24 = vld [vmem:[#allocation1 + $0x28] sm:$0xff]  ;;  %v386_v25 = vld [vmem:[#allocation1 + $0x30] sm:$0xff] }
  0x20   :  { %302 = vst.msk [vmem:[#allocation1 + $0x70] sm:$0xff] %vm105_vm0, %v298_v14  ;;  %308 = vst [vmem:[#allocation1 + $0x78] sm:$0xff] %v307_v17  ;;  %v388_v26 = vld [vmem:[#allocation1 + $0x38] sm:$0xff]  ;;  %v390_v10 = vld [vmem:[#allocation1 + $0x40] sm:$0xff] }
  0x21   :  { %381 = vst [vmem:[%s605_s1 + $0x18] sm:$0xff] %v380_v22  ;;  %383 = vst [vmem:[%s605_s1 + $0x20] sm:$0xff] %v382_v23  ;;  %v392_v27 = vld [vmem:[#allocation1 + $0x48] sm:$0xff]  ;;  %v394_v28 = vld [vmem:[#allocation1 + $0x50] sm:$0xff] }
  0x22   :  { %385 = vst [vmem:[%s605_s1 + $0x28] sm:$0xff] %v384_v24  ;;  %316 = vst.msk [vmem:[#allocation1 + $0x78] sm:$0xff] %vm105_vm0, %v312_v18  ;;  %v396_v29 = vld [vmem:[#allocation1 + $0x58] sm:$0xff] }
  0x23   :  { %387 = vst [vmem:[%s605_s1 + $0x30] sm:$0xff] %v386_v25  ;;  %389 = vst [vmem:[%s605_s1 + $0x38] sm:$0xff] %v388_v26  ;;  %v398_v30 = vld [vmem:[#allocation1 + $0x60] sm:$0xff] }
  0x24   :  { %391 = vst [vmem:[%s605_s1 + $0x40] sm:$0xff] %v390_v10  ;;  %393 = vst [vmem:[%s605_s1 + $0x48] sm:$0xff] %v392_v27  ;;  %v400_v31 = vld [vmem:[#allocation1 + $0x68] sm:$0xff] }
  0x25   :  { %395 = vst [vmem:[%s605_s1 + $0x50] sm:$0xff] %v394_v28  ;;  %397 = vst [vmem:[%s605_s1 + $0x58] sm:$0xff] %v396_v29 }
  0x26   :  { %399 = vst [vmem:[%s605_s1 + $0x60] sm:$0xff] %v398_v30  ;;  %401 = vst [vmem:[%s605_s1 + $0x68] sm:$0xff] %v400_v31 }
  0x27   :  { %v402_v32 = vld [vmem:[#allocation1 + $0x70] sm:$0xff] }
  0x28   :  { %403 = vst [vmem:[%s605_s1 + $0x70] sm:$0xff] %v402_v32 }
  0x29   :  { %v404_v33 = vld [vmem:[#allocation1 + $0x78] sm:$0xff] }
  0x2a   :  { %405 = vst [vmem:[%s605_s1 + $0x78] sm:$0xff] %v404_v33 }

// kernel: fourier_unit_forward.1
= control target key start
LH: loop header
LB: loop body
LE: loop exit
PB: predicated region body
PF: predicated region fallthrough
CT: control target
= control target key end

     0   :  { %s727_s24 = smov 0   ;;  %s823_s0 = inlined_call_operand.vmem [shape: f32[4,4,128], index: 0, kind: input, shape index: {}]   ;;  %s824_s1 = inlined_call_operand.vmem [shape: f32[4,4,128], index: 1, kind: input, shape index: {}]   ;;  %s825_s2 = inlined_call_operand.vmem [shape: f32[8,4], index: 2, kind: input, shape index: {}]   ;;  %s826_s3 = inlined_call_operand.vmem [shape: f32[8,4], index: 3, kind: input, shape index: {}]   ;;  %s827_s4 = inlined_call_operand.vmem [shape: f32[8,8], index: 4, kind: input, shape index: {}]   ;;  %s828_s5 = inlined_call_operand.vmem [shape: f32[8,3], index: 5, kind: input, shape index: {}]   ;;  %s829_s6 = inlined_call_operand.vmem [shape: f32[4,4,128], index: 6, kind: output, shape index: {0}]   ;;  %s830_s7 = inlined_call_operand.vmem [shape: f32[4,4,128], index: 7, kind: output, shape index: {1}]  }
   0x1 LB: > { %s619_s25 = sadd.s32 4294967295, %s674_s24   ;;  %p623_p0 = scmp.ge.s32.totalorder %s674_s24, 1  ;;  %s674_s24 = sphi %s727_s24, %s18_s24  }
   0x2   : > { %p248_p1 = scmp.lt.s32.totalorder %s674_s24, 5 }
   0x4   : > { %p249_p2 = pnand %p623_p0, %p248_p1 }
   0x5   : > { %v305_v0 = vld [vmem:[%s826_s3] sm:$0xff] (!%p249_p2)  ;;  %v676_v2 = vmov (!%p249_p2), 0   ;;  %v677_v3 = vmov (!%p249_p2), 1   ;;  %v678_v4 = vmov (!%p249_p2), 2   ;;  %v679_v5 = vmov (!%p249_p2), 3   ;;  %p286_p3 = scmp.lt.s32.totalorder (!%p249_p2), %s619_s25, 3 }
   0x6   : > { %252 = sbr.rel (%p249_p2) target bundleno = 839 (0x347), region = 44  ;;  %v304_v1 = vld [vmem:[%s825_s2] sm:$0xff] (!%p249_p2)  ;;  %651 = vset.pattern.permute.xlu1 (!%p249_p2), %v676_v2  ;;  %649 = vset.pattern.permute.xlu0 (!%p249_p2), %v676_v2  ;;  %v312_v6 = vlaneseq (!%p249_p2)  ;;  %v680_v47 = vmov (!%p249_p2), 7   ;;  %v681_v48 = vmov (!%p249_p2), 4   ;;  %v682_v49 = vmov (!%p249_p2), 5   ;;  %s683_s18 = smov (!%p249_p2), 1  }
   0x7   : > { %349 = vperm.xlu1 (!%p249_p2), %651, %v305_v0   ;;  %309 = vperm.xlu0 (!%p249_p2), %649, %v304_v1   ;;  %v407_v46 = vld [vmem:[%s827_s4] sm:$0xff] (!%p249_p2)  ;;  %v684_v59 = vmov (!%p249_p2), 6   ;;  %vm405_vm0 = vcmask (!%p249_p2), 7168   ;;  %s685_s19 = smov (!%p249_p2), 126   ;;  %s686_s20 = smov (!%p249_p2), 127  }
   0x8   : > { %v749_v9 = vshrl.u32 (!%p249_p2), %v312_v6, 7  ;;  %v791_v50 = vld [vmem:[%s828_s5] sm:$0xff] (!%p249_p2) }
   0x9   : > { %v395_v51 = vmul.f32 (!%p249_p2), 2.0, %v791_v50  ;;  %v398_v52 = vmul.f32 (!%p249_p2), %v791_v50, %v791_v50 }
   0xa   : > { %v760_v12 = vsub.s32 (!%p249_p2), 0, %v749_v9  ;;  %v763_v13 = vsub.s32 (!%p249_p2), 1, %v749_v9  ;;  %v768_v18 = vsub.s32 (!%p249_p2), 2, %v749_v9  ;;  %v772_v21 = vsub.s32 (!%p249_p2), 3, %v749_v9 }
   0xb   : > { %652 = vset.pattern.permute.xlu1 (!%p249_p2), %v677_v3  ;;  %650 = vset.pattern.permute.xlu0 (!%p249_p2), %v677_v3  ;;  %v399_v55 = vmul.f32 (!%p249_p2), 128.0, %v398_v52 }
   0xc   : > { %358 = vperm.xlu1 (!%p249_p2), %652, %v305_v0   ;;  %318 = vperm.xlu0 (!%p249_p2), %650, %v304_v1  }
   0xd   : > { %s832_s25 = smov (!%p286_p3, %s619_s25), 3 }
   0xe   : > { %s747_s30 = sshll.u32 %s832_s25, 2 }
   0xf   : > { %s289_s10 = scalar_lea.vmem %s823_s0, %s747_s30  ;;  %s293_s13 = scalar_lea.vmem %s824_s1, %s747_s30 }
  0x10   : > { %653 = vset.pattern.permute.xlu1 %v678_v4  ;;  %654 = vset.pattern.permute.xlu0 %v678_v4  ;;  %v302_v10 = vld [vmem:[%s289_s10] sm:$0xf]  ;;  %s297_s23 = scalar_lea.vmem %s829_s6, %s747_s30  ;;  %s301_s27 = scalar_lea.vmem %s830_s7, %s747_s30 }
  0x11   : > { %328 = vperm.xlu1 %653, %v304_v1   ;;  %368 = vperm.xlu0 %654, %v305_v0   ;;  %v303_v15 = vld [vmem:[%s293_s13] sm:$0xf]  ;;  %v315_v16 = vrot.slane %v302_v10, %v760_v12  ;;  %v324_v17 = vrot.slane %v302_v10, %v763_v13  ;;  %v334_v25 = vrot.slane %v302_v10, %v768_v18 }
  0x12   : > { %v364_v19 = vrot.slane %v303_v15, %v763_v13  ;;  %v355_v22 = vrot.slane %v303_v15, %v760_v12  ;;  %v374_v26 = vrot.slane %v303_v15, %v768_v18  ;;  %v344_v29 = vrot.slane %v302_v10, %v772_v21 }
  0x13   : > { %v384_v31 = vrot.slane %v303_v15, %v772_v21 }
  0x15   : > { %655 = vset.pattern.permute.xlu1 %v679_v5  ;;  %656 = vset.pattern.permute.xlu0 %v676_v2 }
  0x16   : > { %338 = vperm.xlu1 %655, %v304_v1  }
  0x1a   : > { %378 = vperm.xlu1 %655, %v305_v0   ;;  %v393_v0 = vmul.f32 128.0, %v791_v50 }
  0x1e   : > { %657 = vset.pattern.permute.xlu1 %v677_v3 }
  0x86   : > { %v350_v7 = vpop.permute.xlu1 %349  ;;  %v310_v8 = vpop.permute.xlu0 %309 }
  0x87   : > { %v316_v23 = vmul.f32 %v315_v16, %v310_v8  ;;  %v356_v32 = vmul.f32 %v355_v22, %v350_v7  ;;  %v454_v16 = vsub.s32 4, %v749_v9 }
  0x8b   : > { %v359_v11 = vpop.permute.xlu1 %358  ;;  %v319_v14 = vpop.permute.xlu0 %318 }
  0x8c   : > { %v325_v24 = vmul.f32 %v324_v17, %v319_v14  ;;  %v365_v28 = vmul.f32 %v364_v19, %v359_v11  ;;  %v464_v19 = vsub.s32 5, %v749_v9 }
  0x8e   : > { %v326_v33 = vadd.f32 %v325_v24, %v316_v23  ;;  %v366_v36 = vadd.f32 %v365_v28, %v356_v32 }
  0x90   : > { %v329_v20 = vpop.permute.xlu1 %328  ;;  %v369_v27 = vpop.permute.xlu0 %368 }
  0x91   : > { %v335_v34 = vmul.f32 %v334_v25, %v329_v20  ;;  %v375_v35 = vmul.f32 %v374_v26, %v369_v27  ;;  %v474_v25 = vsub.s32 6, %v749_v9 }
  0x93   : > { %v336_v39 = vadd.f32 %v335_v34, %v326_v33  ;;  %v376_v40 = vadd.f32 %v375_v35, %v366_v36 }
  0x95   : > { %v339_v30 = vpop.permute.xlu1 %338 }
  0x96   : > { %v345_v37 = vmul.f32 %v344_v29, %v339_v30 }
  0x98   : > { %v346_v42 = vadd.f32 %v345_v37, %v336_v39 }
  0x99   : > { %v379_v38 = vpop.permute.xlu1 %378 }
  0x9a   : > { %v385_v41 = vmul.f32 %v384_v31, %v379_v38 }
  0x9c   : > { %v386_v43 = vadd.f32 %v385_v41, %v376_v40 }
  0x9e   : > { %v779_v44 = vadd.f32 %v386_v43, %v346_v42 }
  0xa0   : > { %388 = vadd.xlane.f32.xlu0 %v779_v44  ;;  %v390_v45 = vmul.f32 %v779_v44, %v779_v44 }
  0xa2   : > { %391 = vadd.xlane.f32.xlu1 %v390_v45 }
  0xb3   : > { %419 = vperm.xlu1 %657, %v407_v46  }
  0xb6   : > { %410 = vperm.xlu0 %656, %v407_v46  }
  0xb7   : > { %658 = vset.pattern.permute.xlu1 %v678_v4 }
  0xb8   : > { %429 = vperm.xlu1 %658, %v407_v46  }
  0xba   : > { %663 = vset.pattern.permute.xlu0 %v680_v47 }
  0xbb   : > { %479 = vperm.xlu0 %663, %v407_v46  }
  0xbc   : > { %659 = vset.pattern.permute.xlu1 %v679_v5 }
  0xbd   : > { %439 = vperm.xlu1 %659, %v407_v46  }
  0xbf   : > { %665 = vset.pattern.permute.xlu0 %v676_v2 }
  0xc0   : > { %505 = vrot.lane.b32.xlu0 %v791_v50, %s685_s19 }
  0xc1   : > { %660 = vset.pattern.permute.xlu1 %v681_v48 }
  0xc2   : > { %449 = vperm.xlu1 %660, %v407_v46  }
  0xc6   : > { %661 = vset.pattern.permute.xlu1 %v682_v49 }
 0x12d   : > { %v389_v53 = vpop.xlane.xlu0 %388 }
 0x12e   : > { %v396_v54 = vmul.f32 %v395_v51, %v389_v53  ;;  %v394_v1 = vadd.f32 %v393_v0, %v389_v53 }
 0x12f   : > { %v392_v56 = vpop.xlane.xlu1 %391 }
 0x130   : > { %v397_v57 = vadd.f32 %v396_v54, %v392_v56 }
 0x132   : > { %v400_v58 = vadd.f32 %v399_v55, %v397_v57 }
 0x133   : > { %v420_v60 = vpop.permute.xlu1 %419 }
 0x134   : > { %402 = vrot.lane.b32.xlu1 %v400_v58, %s683_s18 }
 0x135   : > { %v411_v7 = vpop.permute.xlu0 %410 }
 0x137   : > { %v430_v61 = vpop.permute.xlu1 %429 }
 0x138   : > { %459 = vperm.xlu1 %661, %v407_v46  }
 0x13c   : > { %662 = vset.pattern.permute.xlu1 %v684_v59  ;;  %v440_v62 = vpop.permute.xlu1 %439 }
 0x13d   : > { %469 = vperm.xlu1 %662, %v407_v46  }
 0x141   : > { %664 = vset.pattern.permute.xlu1 %v677_v3  ;;  %v450_v63 = vpop.permute.xlu1 %449 }
 0x1a6   : > { %v403_v2 = vpop.permute.xlu1 %402 }
 0x1a7   : > { %v406_v4 = vsel %vm405_vm0, %v394_v1, %v403_v2 }
 0x1a8   : > { %v416_v5 = vrot.slane %v406_v4, %v760_v12  ;;  %v425_v6 = vrot.slane %v406_v4, %v763_v13  ;;  %v435_v11 = vrot.slane %v406_v4, %v768_v18  ;;  %v445_v15 = vrot.slane %v406_v4, %v772_v21  ;;  %v480_v21 = vpop.permute.xlu0 %479 }
 0x1a9   : > { %v455_v22 = vrot.slane %v406_v4, %v454_v16  ;;  %v484_v12 = vsub.s32 7, %v749_v9  ;;  %v465_v13 = vrot.slane %v406_v4, %v464_v19  ;;  %v475_v29 = vrot.slane %v406_v4, %v474_v25 }
 0x1aa   : > { %v417_v8 = vmul.f32 %v416_v5, %v411_v7  ;;  %v426_v10 = vmul.f32 %v425_v6, %v420_v60  ;;  %v436_v14 = vmul.f32 %v435_v11, %v430_v61  ;;  %v446_v20 = vmul.f32 %v445_v15, %v440_v62 }
 0x1ab   : > { %v456_v26 = vmul.f32 %v455_v22, %v450_v63  ;;  %v485_v27 = vrot.slane %v406_v4, %v484_v12 }
 0x1ac   : > { %v427_v3 = vadd.f32 %v426_v10, %v417_v8  ;;  %v506_v45 = vpop.permute.xlu0 %505 }
 0x1ad   : > { %v486_v33 = vmul.f32 %v485_v27, %v480_v21 }
 0x1ae   : > { %v437_v17 = vadd.f32 %v436_v14, %v427_v3 }
 0x1b0   : > { %v447_v23 = vadd.f32 %v446_v20, %v437_v17 }
 0x1b2   : > { %v457_v28 = vadd.f32 %v456_v26, %v447_v23 }
 0x1b7   : > { %v460_v24 = vpop.permute.xlu1 %459 }
 0x1b8   : > { %v466_v18 = vmul.f32 %v465_v13, %v460_v24 }
 0x1ba   : > { %v467_v31 = vadd.f32 %v466_v18, %v457_v28 }
 0x1bc   : > { %v470_v30 = vpop.permute.xlu1 %469 }
 0x1bd   : > { %v476_v32 = vmul.f32 %v475_v29, %v470_v30 }
 0x1bf   : > { %v477_v34 = vadd.f32 %v476_v32, %v467_v31 }
 0x1c1   : > { %v487_v35 = vadd.f32 %v486_v33, %v477_v34 }
 0x1c3   : > { %v488_v36 = vmul.f32 %v487_v35, %v487_v35  ;;  %v498_v42 = vsub.f32 %v791_v50, %v487_v35 }
 0x1c5   : > { %490 = vrot.lane.b32.xlu1 %v488_v36, %s683_s18 }
 0x237   : > { %v491_v37 = vpop.permute.xlu1 %490 }
 0x238   : > { %v493_v9 = vsub.f32 %v487_v35, %v491_v37 }
 0x23a   : > { %v494_v38 = vmax.f32 %v493_v9, 0.0 }
 0x23c   : > { %v495_v39 = vadd.f32 1e-05, %v494_v38 }
 0x23e   : > { %666 = vrsqrt.f32 %v495_v39 }
 0x248   : > { %v667_v40 = vpop.eup %666 }
 0x249   : > { %v497_v41 = vmul.f32 %v667_v40, %v791_v50 }
 0x24b   : > { %500 = vrot.lane.b32.xlu1 %v497_v41, %s686_s20 }
 0x24f   : > { %510 = vperm.xlu1 %664, %v497_v41  }
 0x2bd   : > { %v501_v43 = vpop.permute.xlu1 %500 }
 0x2be   : > { %v503_v46 = vmul.f32 %v501_v43, %v498_v42 }
 0x2c0   : > { %v508_v47 = vadd.f32 %v506_v45, %v503_v46 }
 0x2c2   : > { %516 = vperm.xlu0 %665, %v508_v47  }
 0x2ce   : > { %v511_v48 = vpop.permute.xlu1 %510 }
 0x2cf   : > { %v513_v49 = vmul.f32 %v511_v48, %v779_v44 }
 0x341   : > { %v517_v51 = vpop.permute.xlu0 %516 }
 0x342   : > { %v519_v52 = vadd.f32 %v517_v51, %v513_v49 }
 0x344   : > { %v520_v53 = vmax.f32 %v519_v52, 0.0 }
 0x346   : > { %521 = vst [vmem:[%s297_s23] sm:$0xf] %v520_v53  ;;  %522 = vst [vmem:[%s301_s27 - $0x4] sm:$0xf0] %v520_v53 }
 0x347 PF: > { %s18_s24 = sadd.s32 1, %s674_s24  }
 0x348   : > { %p15_p4 = scmp.ge.s32.totalorder %s18_s24, 6  }
 0x34a   :  { %17 = sbr.rel (!%p15_p4) target bundleno = 1 (0x1), region = 89 }

</bundles_post_ra>
